<compile_context>
chip_gen: v7x
topology: tpu7x:2x2x1
jax: 0.10.0
libtpu: 0.0.40
codegen_flags: <defaults>
</compile_context>

<pallas_src>
import functools

import jax
import jax.numpy as jnp
from jax import lax
from jax.experimental import pallas as pl
from jax.experimental.pallas import tpu as pltpu


# ----------------------------- kernel helpers ------------------------------ #

def _softmax_lanes(scores):
    # scores: (bt, L) f32; softmax along the last (lane) axis.
    m = jnp.max(scores, axis=-1, keepdims=True)
    p = jnp.exp(scores - m)
    s = jnp.sum(p, axis=-1, keepdims=True)
    # exact reciprocal (still on the EUP slot) so rows sum to 1.
    return p * pl.reciprocal(s, approx=False)


def _emit_probs(o_ref, probs, transpose_out):
    if transpose_out:
        bt, L = probs.shape
        # Lane-dense store: the output block is (L, bt) with bt (a multiple of
        # 128) on the lane axis.  Transpose via an MXU identity matmul: a plain
        # 2-D dot_general lowering, and it keeps the XLU free for the softmax
        # max/sum reductions.
        rows = lax.broadcasted_iota(jnp.int32, (L, L), 0)
        cols = lax.broadcasted_iota(jnp.int32, (L, L), 1)
        eye = (rows == cols).astype(jnp.float32)
        o_ref[...] = lax.dot_general(eye, probs, (((1,), (1,)), ((), ())),
                                     preferred_element_type=jnp.float32)
    else:
        o_ref[...] = probs


# ------------------------------- kernels ----------------------------------- #

def _dot_kernel(h_ref, e_ref, o_ref, *, transpose_out):
    # h_ref: (bt, Lh, H) with Lh in {1, L}; e_ref: (bt, L, H)
    h = h_ref[...].astype(jnp.float32)
    e = e_ref[...].astype(jnp.float32)
    scores = jnp.sum(h * e, axis=-1)            # broadcasts over L when Lh == 1
    _emit_probs(o_ref, _softmax_lanes(scores), transpose_out)


def _general_kernel(h_ref, e_ref, wt_ref, b_ref, o_ref, *, transpose_out):
    bt, L, H = e_ref.shape
    e2 = e_ref[...].reshape(bt * L, H)          # leading-dim merge (cheap when L % 8 == 0)
    # Linear(H, H): energy = e @ W.T + b.  wt is W.T pre-transposed in the
    # wrapper so the contraction is native (K, N) -- no per-step W transpose.
    energy = lax.dot_general(e2, wt_ref[...], (((1,), (0,)), ((), ())),
                             preferred_element_type=jnp.float32)
    energy = (energy + b_ref[...]).reshape(bt, L, H)
    scores = jnp.sum(h_ref[...].astype(jnp.float32) * energy, axis=-1)
    _emit_probs(o_ref, _softmax_lanes(scores), transpose_out)


def _concat_kernel(h_ref, e_ref, wh_ref, we_ref, b_ref, v_ref, o_ref, *, transpose_out):
    bt, L, H = e_ref.shape
    # cat([hidden, encoder]) @ W.T == hidden @ Wh.T + encoder @ We.T with
    # W = [Wh | We]; the split/transpose is done once in the wrapper, so there
    # is no lane-misaligned in-kernel concatenate / relayout per grid step.
    h3 = jnp.broadcast_to(h_ref[...].astype(jnp.float32), (bt, L, H))
    h3 = h3.astype(wh_ref.dtype)                # keep the MXU contraction in bf16
    eh = lax.dot_general(h3.reshape(bt * L, H), wh_ref[...], (((1,), (0,)), ((), ())),
                         preferred_element_type=jnp.float32)
    ee = lax.dot_general(e_ref[...].reshape(bt * L, H), we_ref[...], (((1,), (0,)), ((), ())),
                         preferred_element_type=jnp.float32)
    energy = jnp.tanh((eh + ee + b_ref[...]).reshape(bt, L, H))
    scores = jnp.sum(v_ref[...] * energy, axis=-1)
    _emit_probs(o_ref, _softmax_lanes(scores), transpose_out)


# ---------------------------- sizing heuristics ----------------------------- #

def _num_tensorcores():
    # v7x (and megacore v4/v5p) expose 2 TensorCores per device; v5e/v6e have 1.
    try:
        kind = jax.devices()[0].device_kind.lower()
    except Exception:
        kind = ""
    return 2 if any(t in kind for t in ("v7", "7x", "v4", "v5p")) else 1


def _vmem_budget_and_limit():
    # Physical VMEM: 128 MiB on v5e/v6e, 64 MiB per TensorCore on v7x.
    try:
        info = pltpu.get_tpu_info()
        phys = int(getattr(info, "vmem_capacity_bytes", 0) or 0) or 128 * 2**20
    except Exception:
        phys = 128 * 2**20
    limit = min(phys // 2, 64 * 2**20)      # explicit scoped limit (32 MiB on v7x)
    budget = (3 * limit) // 8               # pipelined-block sizing target, with headroom
    return budget, limit


def _choose_bt(B, L, Lh, H, in_bytes, num_tc, vmem_budget):
    """Batch rows per grid step."""
    # Per batch-row VMEM: double-buffered seq inputs (encoder + hidden), double-
    # buffered f32 output, ~3 f32 (L, H) compute intermediates.
    per_row = 2 * (L + Lh) * H * in_bytes + 2 * L * 4 + 3 * L * H * 4
    fixed = 6 * H * H * in_bytes + (1 << 14)             # weight blocks + slack
    bt = max(1, min(B, (vmem_budget - fixed) // per_row))
    if num_tc > 1 and B >= num_tc:
        # Keep >= ~4 grid steps per TensorCore (when B allows) so the parallel
        # axis shards across cores and DMA overlaps compute.  On single-TC
        # chips we deliberately do NOT split: biggest tile = closest to the
        # HBM roofline, and splitting only adds per-step overhead.
        min_steps = min(B, 4 * num_tc)
        bt = min(bt, max(1, B // min_steps))
    if bt >= 8:
        bt -= bt % 8                                      # sublane-friendly
    while B % bt:
        bt -= 1
    return bt


# -------------------------------- wrapper ----------------------------------- #

def attn_forward(method, hidden, encoder_outputs, params, *,
                 compute_dtype=jnp.bfloat16, force_pallas=False,
                 xla_fastpath_max_elems=1 << 14):
    """Pallas forward pass. encoder_outputs: (B, L, H). Returns (B, L, 1) f32."""
    encoder_outputs = jnp.asarray(encoder_outputs, jnp.float32)
    B, L, H = encoder_outputs.shape

    hidden = jnp.asarray(hidden, jnp.float32)
    while hidden.ndim < 3:                   # torch-style trailing-dim broadcast
        hidden = hidden[None]
    Bh, Lh, Hh = hidden.shape
    if Hh != H or Lh not in (1, L) or Bh not in (1, B):
        raise ValueError("hidden is not broadcastable to encoder_outputs")
    if Bh != B:
        hidden = jnp.broadcast_to(hidden, (B, Lh, H))   # cheap (no L factor)

    if not force_pallas and B * L * H <= xla_fastpath_max_elems:
        # At toy sizes a pallas_call is pure per-call overhead; let XLA fuse it.
        return attn_reference(method, hidden, encoder_outputs, params)

    in_dtype = jnp.dtype(compute_dtype)
    h = hidden.astype(in_dtype)
    e = encoder_outputs.astype(in_dtype)

    budget, vmem_limit = _vmem_budget_and_limit()
    num_tc = _num_tensorcores()
    bt = _choose_bt(B, L, Lh, H, in_dtype.itemsize, num_tc, budget)
    G = B // bt
    transpose_out = (L % 128 != 0) and (bt % 128 == 0)

    h4 = h.reshape(G, bt, Lh, H)
    e4 = e.reshape(G, bt, L, H)

    h_spec = pl.BlockSpec((None, bt, Lh, H), lambda g: (g, 0, 0, 0))
    e_spec = pl.BlockSpec((None, bt, L, H), lambda g: (g, 0, 0, 0))
    full2 = lambda shape: pl.BlockSpec(shape, lambda g: (0, 0))
    if transpose_out:
        out_shape = jax.ShapeDtypeStruct((G, L, bt), jnp.float32)
        out_spec = pl.BlockSpec((None, L, bt), lambda g: (g, 0, 0))
    else:
        out_shape = jax.ShapeDtypeStruct((G, bt, L), jnp.float32)
        out_spec = pl.BlockSpec((None, bt, L), lambda g: (g, 0, 0))
    cp = pltpu.CompilerParams(dimension_semantics=("parallel",),
                              vmem_limit_bytes=int(vmem_limit))

    if method == "dot":
        kern = functools.partial(_dot_kernel, transpose_out=transpose_out)
        weights = pl.pallas_call(
            kern, out_shape=out_shape, grid=(G,),
            in_specs=[h_spec, e_spec], out_specs=out_spec,
            compiler_params=cp)(h4, e4)

    elif method == "general":
        wt = params["attn_w"].T.astype(in_dtype)          # (H, H): energy = e @ wt
        b2 = params["attn_b"].reshape(1, H).astype(jnp.float32)
        kern = functools.partial(_general_kernel, transpose_out=transpose_out)
        weights = pl.pallas_call(
            kern, out_shape=out_shape, grid=(G,),
            in_specs=[h_spec, e_spec, full2((H, H)), full2((1, H))],
            out_specs=out_spec, compiler_params=cp)(h4, e4, wt, b2)

    elif method == "concat":
        W = params["attn_w"]                              # (H, 2H); cat = [hidden, encoder]
        wh = W[:, :H].T.astype(in_dtype)                  # (H, H)
        we = W[:, H:].T.astype(in_dtype)                  # (H, H)
        b2 = params["attn_b"].reshape(1, H).astype(jnp.float32)
        v2 = params["v"].reshape(1, H).astype(jnp.float32)
        kern = functools.partial(_concat_kernel, transpose_out=transpose_out)
        weights = pl.pallas_call(
            kern, out_shape=out_shape, grid=(G,),
            in_specs=[h_spec, e_spec, full2((H, H)), full2((H, H)),
                      full2((1, H)), full2((1, H))],
            out_specs=out_spec, compiler_params=cp)(h4, e4, wh, we, b2, v2)

    else:
        raise ValueError(method, "is not an appropriate attention method.")

    if transpose_out:
        weights = jnp.swapaxes(weights, 1, 2)             # (G, L, bt) -> (G, bt, L)
    # Cheap unsqueeze(2) outside the kernel.
    return weights.reshape(B, L)[..., None]


# --------------------------- pure-JAX reference ----------------------------- #

def attn_reference(method, hidden, encoder_outputs, params):
    if method == "dot":
        energies = jnp.sum(hidden * encoder_outputs, axis=2)
    elif method == "general":
        energy = encoder_outputs @ params["attn_w"].T + params["attn_b"]
        energies = jnp.sum(hidden * energy, axis=2)
    elif method == "concat":
        B, L, H = encoder_outputs.shape
        hid = jnp.broadcast_to(hidden, (B, L, H))
        cat = jnp.concatenate([hid, encoder_outputs], axis=2)
        energy = jnp.tanh(cat @ params["attn_w"].T + params["attn_b"])
        energies = jnp.sum(params["v"] * energy, axis=2)
    else:
        raise ValueError(method)
    return jax.nn.softmax(energies, axis=1)[..., None]


# ---------------------------------- main ------------------------------------ #

if __name__ == "__main__":
    key = jax.random.PRNGKey(0)
    _keys = iter(jax.random.split(key, 64))

    def make_params(H):
        bg = 1.0 / (H ** 0.5)
        bc = 1.0 / ((2 * H) ** 0.5)
        return {
            "dot": {},
            "general": {
                "attn_w": jax.random.uniform(next(_keys), (H, H), jnp.float32, -bg, bg),
                "attn_b": jax.random.uniform(next(_keys), (H,), jnp.float32, -bg, bg),
            },
            "concat": {
                "attn_w": jax.random.uniform(next(_keys), (H, 2 * H), jnp.float32, -bc, bc),
                "attn_b": jax.random.uniform(next(_keys), (H,), jnp.float32, -bc, bc),
                "v": jax.random.normal(next(_keys), (H,), jnp.float32),
            },
        }

    def _round_bf16(x):
        return x.astype(jnp.bfloat16).astype(jnp.float32)

    def check(B, L, H, hidden_L, compute_dtype, atol):
        params = make_params(H)
        hidden = jax.random.normal(next(_keys), (B, hidden_L, H), jnp.float32)
        enc = jax.random.normal(next(_keys), (B, L, H), jnp.float32)

        if jnp.dtype(compute_dtype) == jnp.dtype(jnp.bfloat16):
            # Compare against the reference evaluated on the same bf16-rounded
            # inputs/weights (bias and v stay f32 in the kernel).
            rh, re_ = _round_bf16(hidden), _round_bf16(enc)
            rparams = {m: {k: (_round_bf16(v) if k == "attn_w" else v)
                           for k, v in p.items()} for m, p in params.items()}
        else:
            rh, re_, rparams = hidden, enc, params

        for method in ("dot", "general", "concat"):
            out = attn_forward(method, hidden, enc, params[method],
                               compute_dtype=compute_dtype, force_pallas=True)
            out = jax.block_until_ready(out)
            ref = attn_reference(method, rh, re_, rparams[method])
            assert out.shape == (B, L, 1), (method, out.shape)
            err = float(jnp.max(jnp.abs(out - ref)))
            assert jnp.allclose(out, ref, atol=atol, rtol=atol), (method, err)

    # Small config from the module spec (full-rank hidden, exact f32 math).
    check(B=2, L=8, H=32, hidden_L=8, compute_dtype=jnp.float32, atol=5e-3)
    # Realistic Luong decode step: a single query state broadcast over L inside
    # the kernel, bf16 loads with f32 accumulation, large batch tiles and the
    # lane-dense (transposed) output path.
    check(B=1024, L=8, H=32, hidden_L=1, compute_dtype=jnp.bfloat16, atol=2e-2)

    print("KERNEL_OK")
</pallas_src>

<mosaic_0001>
module attributes {stable_mosaic.version = 11 : i64} {
  func.func @_dot_kernel(%arg0: i32, %arg1: memref<1x2x8x32xf32, #tpu.memory_space<vmem>>, %arg2: memref<1x2x8x32xf32, #tpu.memory_space<vmem>>, %arg3: memref<1x2x8xf32, #tpu.memory_space<vmem>>) attributes {dimension_semantics = [#tpu.dimension_semantics<parallel>], iteration_bounds = array<i64: 1>, scalar_prefetch = 0 : i64, scratch_operands = 0 : i64, tpu.core_type = #tpu.core_type<tc>, window_params = [{transform_indices = @transform_0, window_bounds = array<i64: 1, 2, 8, 32>}, {transform_indices = @transform_1, window_bounds = array<i64: 1, 2, 8, 32>}, {transform_indices = @transform_2, window_bounds = array<i64: 1, 2, 8>}]} {
    %c0 = arith.constant 0 : index
    %c0_0 = arith.constant 0 : index
    %c0_1 = arith.constant 0 : index
    %c0_2 = arith.constant 0 : index
    %0 = vector.load %arg1[%c0, %c0_0, %c0_1, %c0_2] : memref<1x2x8x32xf32, #tpu.memory_space<vmem>>, vector<1x2x8x32xf32>
    %1 = vector.shape_cast %0 : vector<1x2x8x32xf32> to vector<2x8x32xf32>
    %c0_3 = arith.constant 0 : index
    %c0_4 = arith.constant 0 : index
    %c0_5 = arith.constant 0 : index
    %c0_6 = arith.constant 0 : index
    %2 = vector.load %arg2[%c0_3, %c0_4, %c0_5, %c0_6] : memref<1x2x8x32xf32, #tpu.memory_space<vmem>>, vector<1x2x8x32xf32>
    %3 = vector.shape_cast %2 : vector<1x2x8x32xf32> to vector<2x8x32xf32>
    %4 = arith.mulf %1, %3 : vector<2x8x32xf32>
    %cst = arith.constant dense<0.000000e+00> : vector<2x8xf32>
    %5 = vector.multi_reduction <add>, %4, %cst [2] : vector<2x8x32xf32> to vector<2x8xf32>
    %cst_7 = arith.constant dense<0xFF800000> : vector<2xf32>
    %6 = vector.multi_reduction <maximumf>, %5, %cst_7 [1] : vector<2x8xf32> to vector<2xf32>
    %7 = vector.shape_cast %6 : vector<2xf32> to vector<2x1xf32>
    %8 = vector.broadcast %7 : vector<2x1xf32> to vector<2x8xf32>
    %9 = arith.subf %5, %8 : vector<2x8xf32>
    %10 = math.exp %9 : vector<2x8xf32>
    %cst_8 = arith.constant dense<0.000000e+00> : vector<2xf32>
    %11 = vector.multi_reduction <add>, %10, %cst_8 [1] : vector<2x8xf32> to vector<2xf32>
    %12 = vector.shape_cast %11 : vector<2xf32> to vector<2x1xf32>
    %13 = tpu.reciprocal %12 : vector<2x1xf32> -> vector<2x1xf32>
    %14 = vector.broadcast %13 : vector<2x1xf32> to vector<2x8xf32>
    %15 = arith.mulf %10, %14 : vector<2x8xf32>
    %c0_9 = arith.constant 0 : index
    %c0_10 = arith.constant 0 : index
    %c0_11 = arith.constant 0 : index
    %16 = vector.load %arg3[%c0_9, %c0_10, %c0_11] : memref<1x2x8xf32, #tpu.memory_space<vmem>>, vector<1x2x8xf32>
    %17 = vector.shape_cast %16 : vector<1x2x8xf32> to vector<2x8xf32>
    %18 = vector.shape_cast %15 : vector<2x8xf32> to vector<1x2x8xf32>
    tpu.vector_store %arg3[%c0_9, %c0_10, %c0_11], %18 {strides = array<i32>} : memref<1x2x8xf32, #tpu.memory_space<vmem>>, vector<1x2x8xf32>,
    return
  }
  func.func @transform_0(%arg0: i32) -> (i32, i32, i32, i32) {
    %c0_i32 = arith.constant 0 : i32
    %c0_i32_0 = arith.constant 0 : i32
    %c0_i32_1 = arith.constant 0 : i32
    %c0_i32_2 = arith.constant 0 : i32
    return %arg0, %c0_i32, %c0_i32_0, %c0_i32_1 : i32, i32, i32, i32
  }
  func.func @transform_1(%arg0: i32) -> (i32, i32, i32, i32) {
    %c0_i32 = arith.constant 0 : i32
    %c0_i32_0 = arith.constant 0 : i32
    %c0_i32_1 = arith.constant 0 : i32
    %c0_i32_2 = arith.constant 0 : i32
    return %arg0, %c0_i32, %c0_i32_0, %c0_i32_1 : i32, i32, i32, i32
  }
  func.func @transform_2(%arg0: i32) -> (i32, i32, i32) {
    %c0_i32 = arith.constant 0 : i32
    %c0_i32_0 = arith.constant 0 : i32
    %c0_i32_1 = arith.constant 0 : i32
    return %arg0, %c0_i32, %c0_i32_0 : i32, i32, i32
  }
}

</mosaic_0001>

<bundles_post_ra>
// kernel: tpu_custom_call.1
= control target key start
LH: loop header
LB: loop body
LE: loop exit
PB: predicated region body
PF: predicated region fallthrough
CT: control target
= control target key end

     0   :  { %7 = vsyncpa [#allocation3], 0  ;;  %s308_s0 = inlined_call_operand.hbm [shape: f32[1,2,8,32], index: 0, kind: input, shape index: {}]   ;;  %s309_s1 = inlined_call_operand.hbm [shape: f32[1,2,8,32], index: 1, kind: input, shape index: {}]   ;;  %s310_s2 = inlined_call_operand.hbm [shape: f32[1,2,8], index: 2, kind: output, shape index: {}]  }
   0x1   :  { %8 = vsyncpa [#allocation6], 0 }
   0x2   :  { %9 = vsyncpa [#allocation4], 0  ;;  %s245_s9 = smov [#allocation2]   ;;  %s173_s13 = scalar_lea.hbm %s308_s0, 256 }
   0x3   :  { %s15_s10 = sshll.u32 %s245_s9, 4  ;;  %p174_p0 = scmp.ne.s32.totalorder %s308_s0, %s173_s13  ;;  %s16_s10 = int_to_ptr.vmem [resolvable:$true] %s15_s10 }
   0x4   :  { %p177_p1 = scmp.lt.u32.totalorder %s173_s13, %s308_s0 }
   0x6   :  { %p179_p2 = pnand %p177_p1, %p174_p0 }
   0x8   :  { %182 = shalt.err (!%p179_p2)
}
   0x9   :  { %s183_s18 = scalar_lea.vmem %s16_s10, 256  ;;  %p188_p4 = scmp.lt.s32.totalorder %s16_s10, %s16_s10 }
   0xa   :  { %p184_p3 = scmp.ne.s32.totalorder %s16_s10, %s183_s18  ;;  %p189_p5 = scmp.lt.s32.totalorder %s183_s18, %s183_s18 }
   0xc   :  { %p190_p6 = por %p189_p5, %p188_p4 }
   0xe   :  { %p191_p7 = pnand %p190_p6, %p184_p3 }
  0x10   :  { %194 = shalt.err (!%p191_p7)
}
  0x11   :  { %s246_s19 = smov 128   ;;  %s247_s20 = smov 8  }
  0x12   :  { %21 = dma.hbm_to_vmem [thread:$0]  %s308_s0, 256, %s16_s10, [#allocation3], %s246_s19, %s246_s19, %s247_s20  }
  0x13   :  { %s248_s23 = smov [#allocation5]   ;;  %s195_s27 = scalar_lea.hbm %s309_s1, 256 }
  0x14   :  { %s27_s24 = sshll.u32 %s248_s23, 4  ;;  %p196_p8 = scmp.ne.s32.totalorder %s309_s1, %s195_s27  ;;  %s28_s24 = int_to_ptr.vmem [resolvable:$true] %s27_s24 }
  0x15   :  { %p199_p9 = scmp.lt.u32.totalorder %s195_s27, %s309_s1 }
  0x17   :  { %p201_p10 = pnand %p199_p9, %p196_p8 }
  0x19   :  { %204 = shalt.err (!%p201_p10)
}
  0x1a   :  { %s205_s4 = scalar_lea.vmem %s28_s24, 256  ;;  %p210_p12 = scmp.lt.s32.totalorder %s28_s24, %s28_s24 }
  0x1b   :  { %p206_p11 = scmp.ne.s32.totalorder %s28_s24, %s205_s4  ;;  %p211_p13 = scmp.lt.s32.totalorder %s205_s4, %s205_s4 }
  0x1d   :  { %p212_p0 = por %p211_p13, %p210_p12 }
  0x1f   :  { %p213_p1 = pnand %p212_p0, %p206_p11 }
  0x21   :  { %216 = shalt.err (!%p213_p1)
}
  0x22   :  { %33 = dma.hbm_to_vmem [thread:$0]  %s309_s1, 256, %s28_s24, [#allocation6], %s246_s19, %s246_s19, %s247_s20  }
  0x23   :  { %239 = dma.done.wait [#allocation3], 256  }
  0x24   :  { %240 = vsyncadd [#allocation3], 4294967040 }
  0x25   :  { %241 = dma.done.wait [#allocation6], 256  }
  0x26   :  { %242 = vsyncadd [#allocation6], 4294967040  ;;  %v40_v0 = vld [vmem:[#allocation2] sm:$0xff]  ;;  %v42_v1 = vld [vmem:[#allocation5] sm:$0xff]  ;;  %vm46_vm0 = vcmask 261120   ;;  %v55_v8 = vlaneseq  ;;  %vm65_vm1 = vcmask 1041409  }
  0x27   :  { %v41_v2 = vld [vmem:[#allocation2 + $0x8] sm:$0xff]  ;;  %v44_v3 = vmul.f32 %v42_v1, %v40_v0  ;;  %v43_v4 = vld [vmem:[#allocation5 + $0x8] sm:$0xff]  ;;  %vm68_vm2 = vcmask 58368   ;;  %v249_v18 = vmov 0   ;;  %s250_s1 = smov [#allocation7]  }
  0x28   :  { %v45_v5 = vmul.f32 %v43_v4, %v41_v2  ;;  %v56_v9 = vand.u32 127, %v55_v8  ;;  %v58_v10 = vshrl.u32 %v55_v8, 7  ;;  %166 = vset.pattern.permute.xlu0 %v249_v18  ;;  %165 = vset.pattern.permute.xlu1 %v249_v18  ;;  %s149_s6 = sshll.u32 %s250_s1, 4  ;;  %s150_s6 = int_to_ptr.vmem [resolvable:$true] %s149_s6 }
  0x29   :  { %v47_v6 = vsel %vm46_vm0, %v44_v3, 0.0  ;;  %s217_s7 = scalar_lea.vmem %s150_s6, 32  ;;  %p222_p3 = scmp.lt.s32.totalorder %s150_s6, %s150_s6 }
  0x2a   :  { %48 = vadd.xlane.f32.xlu0 %v47_v6  ;;  %v50_v7 = vsel %vm46_vm0, %v45_v5, 0.0  ;;  %v59_v12 = vsub.s32 %v56_v9, %v58_v10  ;;  %v75_v19 = vsub.s32 0, %v58_v10  ;;  %v79_v20 = vsub.s32 1, %v58_v10  ;;  %p218_p2 = scmp.ne.s32.totalorder %s150_s6, %s217_s7  ;;  %p223_p4 = scmp.lt.s32.totalorder %s217_s7, %s217_s7 }
  0x2c   :  { %p224_p5 = por %p223_p4, %p222_p3 }
  0x2e   :  { %51 = vadd.xlane.f32.xlu0 %v50_v7  ;;  %p225_p6 = pnand %p224_p5, %p218_p2 }
  0xb7   :  { %v49_v11 = vpop.xlane.xlu0 %48 }
  0xb8   :  { %v60_v14 = vrot.slane %v49_v11, %v59_v12 }
  0xbb   :  { %v52_v13 = vpop.xlane.xlu0 %51 }
  0xbc   :  { %v64_v15 = vrot.slane %v52_v13, %v59_v12 }
  0xbe   :  { %v66_v16 = vsel %vm65_vm1, %v64_v15, %v60_v14 }
  0xbf   :  { %v69_v17 = vsel %vm68_vm2, %v66_v16, -inf }
  0xc0   :  { %70 = vmax.xlane.f32.xlu1 %v69_v17 }
 0x14d   :  { %v71_v21 = vpop.xlane.xlu1 %70 }
 0x14e   :  { %v76_v22 = vrot.slane %v71_v21, %v75_v19  ;;  %v80_v23 = vrot.slane %v71_v21, %v79_v20 }
 0x150   :  { %v83_v24 = vsub.f32 %v49_v11, %v76_v22  ;;  %v84_v25 = vsub.f32 %v52_v13, %v80_v23 }
 0x152   :  { %v85_v26 = vmul.f32 1.442695, %v83_v24  ;;  %v87_v27 = vmul.f32 1.442695, %v84_v25 }
 0x154   :  { %167 = vpow2.f32 %v85_v26 }
 0x155   :  { %169 = vpow2.f32 %v87_v27 }
 0x15e   :  { %v168_v28 = vpop.eup %167 }
 0x15f   :  { %v170_v29 = vpop.eup %169  ;;  %92 = vperm.xlu1 %165, %v168_v28  }
 0x160   :  { %95 = vperm.xlu0 %166, %v170_v29  }
 0x1de   :  { %v93_v30 = vpop.permute.xlu1 %92 }
 0x1df   :  { %v96_v31 = vpop.permute.xlu0 %95  ;;  %v100_v32 = vrot.slane %v93_v30, %v59_v12 }
 0x1e0   :  { %v104_v33 = vrot.slane %v96_v31, %v59_v12 }
 0x1e2   :  { %v105_v34 = vsel %vm65_vm1, %v104_v33, %v100_v32 }
 0x1e3   :  { %v107_v35 = vsel %vm68_vm2, %v105_v34, 0.0 }
 0x1e4   :  { %108 = vadd.xlane.f32.xlu1 %v107_v35 }
 0x271   :  { %v109_v36 = vpop.xlane.xlu1 %108 }
 0x272   :  { %171 = vrcp.f32 %v109_v36 }
 0x27c   :  { %v172_v37 = vpop.eup %171 }
 0x27d   :  { %v115_v38 = vrot.slane %v172_v37, %v75_v19  ;;  %v119_v40 = vrot.slane %v172_v37, %v79_v20 }
 0x27f   :  { %v122_v39 = vmul.f32 %v168_v28, %v115_v38  ;;  %v123_v41 = vmul.f32 %v170_v29, %v119_v40 }
 0x281   :  { %127 = vperm.xlu0 %166, %v122_v39  }
 0x285   :  { %130 = vperm.xlu0 %166, %v123_v41  }
 0x300   :  { %v128_v42 = vpop.permute.xlu0 %127 }
 0x301   :  { %v135_v44 = vrot.slane %v128_v42, %v59_v12 }
 0x304   :  { %v131_v43 = vpop.permute.xlu0 %130 }
 0x305   :  { %v139_v45 = vrot.slane %v131_v43, %v59_v12 }
 0x307   :  { %v140_v46 = vsel %vm65_vm1, %v139_v45, %v135_v44 }
 0x308   :  { %142 = vst.msk [vmem:[#allocation7] sm:$0x3] %vm68_vm2, %v140_v46 }
 0x309   :  { %228 = shalt.err (!%p225_p6)
}
 0x30a   :  { %s229_s10 = scalar_lea.hbm %s310_s2, 32 }
 0x30b   :  { %p230_p7 = scmp.ne.s32.totalorder %s310_s2, %s229_s10  ;;  %p233_p8 = scmp.lt.u32.totalorder %s229_s10, %s310_s2 }
 0x30d   :  { %p235_p9 = pnand %p233_p8, %p230_p7 }
 0x30f   :  { %238 = shalt.err (!%p235_p9)
}
 0x310   :  { %152 = dma.vmem_to_hbm [thread:$0]  %s150_s6, 32, %s310_s2, [#allocation4]  }
 0x311   :  { %243 = dma.done.wait [#allocation4], 32  }
 0x312   :  { %244 = vsyncadd [#allocation4], 4294967264 }
 0x313   :  { %156 = vsyncpa [#allocation3], 1 }
 0x314   :  { %157 = vsyncpa [#allocation6], 1 }
 0x315   :  { %158 = vsyncpa [#allocation4], 1 }

</bundles_post_ra>
